<compile_context>
chip_gen: v5e
topology: v5e:2x2
jax: 0.10.0
libtpu: 0.0.40
codegen_flags: <defaults>
</compile_context>

<pallas_src>
import math

import jax
import jax.numpy as jnp
from jax import lax
from jax.experimental import pallas as pl
from jax.experimental.pallas import tpu as pltpu


def _swap_kernel(params_ref, x_ref, o_ref):
    """One row tile of the swapped map.

    params_ref : SMEM int32[5] = [ps, y0, x0, y1, x1]   (scalar prefetch)
    x_ref      : VMEM (hp, wp) -- full (padded) original map, resident block
    o_ref      : VMEM (tm, wp) -- this grid step's output row tile
    """
    ps = params_ref[0]
    y0 = params_ref[1]
    x0 = params_ref[2]
    y1 = params_ref[3]
    x1 = params_ref[4]

    hp, wp = x_ref.shape
    tm = o_ref.shape[0]
    r0 = pl.multiple_of(pl.program_id(0) * tm, tm)   # first global row of tile

    # Pass-through row tile from the resident map: single load.
    base = x_ref[pl.ds(r0, tm), :]

    def row_hit(dy):
        return (dy < r0 + tm) & (dy + ps > r0)

    hit = (ps > 0) & (row_hit(y0) | row_hit(y1))

    @pl.when(jnp.logical_not(hit))
    def _():
        o_ref[...] = base                               # single lane-dense store

    @pl.when(hit)
    def _():
        # Shared destination coordinate grids (built once per hit tile).
        gr = lax.broadcasted_iota(jnp.int32, (tm, wp), 0) + r0
        gc = lax.broadcasted_iota(jnp.int32, (tm, wp), 1)

        def patch(cur, dy, dx, sy, sx):
            # cur[r, c] <- x[sy + (r - dy), sx + (c - dx)]
            # for (r, c) in [dy, dy+ps) x [dx, dx+ps) intersected with this tile.
            off = r0 + sy - dy                     # local row l sources x[off + l]
            start = jnp.clip(off, 0, hp - tm)      # clamped band start (always valid)
            band = x_ref[pl.ds(start, tm), :]      # (tm, wp) source row band
            # Residual row realignment (XLU sublane rotate).  Rows that wrap
            # around are never selected by the destination mask below.
            band = pltpu.roll(band, shift=(start - off) % tm, axis=0)
            # Column realignment (XLU lane rotate); wrapped lanes likewise
            # never selected by the mask.
            band = pltpu.roll(band, shift=(dx - sx) % wp, axis=1)
            mask = (gr >= dy) & (gr < dy + ps) & (gc >= dx) & (gc < dx + ps)
            return jnp.where(mask, band, cur)

        out = patch(base, y0, x0, y1, x1)   # patch-A rect <- patch-B content
        out = patch(out, y1, x1, y0, x0)    # patch-B rect <- patch-A content (wins)
        o_ref[...] = out                    # single lane-dense store


def _round_up(n, m):
    return ((n + m - 1) // m) * m


def _pick_tile_rows(hp, wp, itemsize):
    """Row-tile height: whole map for small inputs, ~<=512-row tiles otherwise."""
    if hp * wp * itemsize <= (2 << 20):
        return hp                                    # single grid step
    for tm in range(512, 7, -8):                     # largest mult-of-8 divisor <= 512
        if hp % tm == 0:
            return tm
    return hp


def swap_code_forward(x, params):
    """Pallas-backed SwapCode.forward.

    x      : array whose leading dims are all 1 (PyTorch module contract).
    params : int32[5] = [ps, y0, x0, y1, x1]; dynamic, so changing the random
             patch parameters between calls does NOT trigger a recompile.
    """
    x_shape = x.shape
    H, W = x_shape[-2], x_shape[-1]
    lead = 1
    for d in x_shape[:-2]:
        lead *= d
    if lead != 1:
        raise ValueError("SwapCode.forward requires all leading dims == 1")

    x2d = x.reshape(H, W)
    hp = _round_up(H, 8)          # sublane-aligned rows
    wp = _round_up(W, 128)        # lane-dense columns (full-128 vst, roll-friendly)
    padded = (hp, wp) != (H, W)
    if padded:
        x2d = jnp.pad(x2d, ((0, hp - H), (0, wp - W)))

    itemsize = jnp.dtype(x2d.dtype).itemsize
    tm = _pick_tile_rows(hp, wp, itemsize)
    params = params.astype(jnp.int32)

    # Resident map (double-buffered by the pipeline) + output tiles + temporaries.
    need = (2 * hp * wp + 2 * tm * wp) * itemsize + (2 << 20)
    vmem_limit = int(min(max(2 * need, 32 << 20), 64 << 20))   # 64 MiB = v7x physical

    grid_spec = pltpu.PrefetchScalarGridSpec(
        num_scalar_prefetch=1,
        grid=(hp // tm,),
        in_specs=[pl.BlockSpec((hp, wp), lambda i, p: (0, 0))],   # resident map
        out_specs=pl.BlockSpec((tm, wp), lambda i, p: (i, 0)),    # row tiles
    )
    out = pl.pallas_call(
        _swap_kernel,
        out_shape=jax.ShapeDtypeStruct((hp, wp), x2d.dtype),
        grid_spec=grid_spec,
        compiler_params=pltpu.CompilerParams(
            dimension_semantics=("arbitrary",),   # don't duplicate resident map per TC
            vmem_limit_bytes=vmem_limit,
        ),
    )(params, x2d)

    if padded:
        out = out[:H, :W]
    return out.reshape(x_shape)


def get_params(h, w, key, patch_scale=(0.0, 0.25)):
    """Host-side replica of SwapCode.get_params (deterministic via jax.random)."""
    ms = min(h, w)
    key, ku = jax.random.split(key)
    u = float(jax.random.uniform(ku, (), minval=patch_scale[0],
                                 maxval=patch_scale[1]))
    ps = int(ms * u)
    while True:
        key, k0, k1, k2, k3 = jax.random.split(key, 5)
        y0 = int(jax.random.randint(k0, (), 0, h - ps))
        x0 = int(jax.random.randint(k1, (), 0, w - ps))
        y1 = int(jax.random.randint(k2, (), 0, h - ps))
        x1 = int(jax.random.randint(k3, (), 0, w - ps))
        if math.sqrt((y1 - y0) ** 2 + (x1 - x0) ** 2) > ps:
            break
    return ps, y0, x0, y1, x1


def _reference(x, params):
    """Plain-JAX replica of the PyTorch forward, for validation."""
    ps, y0, x0, y1, x1 = [int(v) for v in params]
    H, W = x.shape[-2], x.shape[-1]
    x2d = x.reshape(H, W)
    out = x2d
    out = out.at[y0:y0 + ps, x0:x0 + ps].set(x2d[y1:y1 + ps, x1:x1 + ps])
    out = out.at[y1:y1 + ps, x1:x1 + ps].set(x2d[y0:y0 + ps, x0:x0 + ps])
    return out.reshape(x.shape)


if __name__ == "__main__":
    root = jax.random.PRNGKey(0)
    k_data, k_p1, k_p2, k_int, k_mid, k_big = jax.random.split(root, 6)

    fwd = jax.jit(swap_code_forward)

    # Case 1/2: canonical SwapCode input (leading dims all 1, 16x16 code map).
    H, W = 16, 16
    x = jax.random.normal(k_data, (1, 1, H, W), dtype=jnp.float32)
    p1 = get_params(H, W, k_p1)                  # host RNG glue, as in PyTorch
    out1 = jax.block_until_ready(fwd(x, jnp.array(p1, jnp.int32)))
    assert out1.shape == x.shape and out1.dtype == x.dtype
    assert bool(jnp.allclose(out1, _reference(x, p1))), "case 1"

    p2 = get_params(H, W, k_p2)                  # fresh params, same compiled kernel
    out2 = jax.block_until_ready(fwd(x, jnp.array(p2, jnp.int32)))
    assert bool(jnp.allclose(out2, _reference(x, p2))), "case 2"

    # Case 3: integer code map (no matmuls anywhere -> exact for int32).
    xi = jax.random.randint(k_int, (1, H, W), 0, 1024, dtype=jnp.int32)
    p3 = (3, 2, 1, 9, 10)
    out3 = jax.block_until_ready(fwd(xi, jnp.array(p3, jnp.int32)))
    assert bool(jnp.array_equal(out3, _reference(xi, p3))), "case 3"

    # Case 4/5: 128x128 map (single grid step, zero padding), incl. overlapping
    # patches ("second write wins").
    H2, W2 = 128, 128
    x2 = jax.random.normal(k_mid, (1, H2, W2), dtype=jnp.float32)
    p4 = (20, 25, 5, 60, 90)
    p5 = (20, 30, 30, 44, 44)
    out4 = jax.block_until_ready(fwd(x2, jnp.array(p4, jnp.int32)))
    out5 = jax.block_until_ready(fwd(x2, jnp.array(p5, jnp.int32)))
    assert bool(jnp.allclose(out4, _reference(x2, p4))), "case 4"
    assert bool(jnp.allclose(out5, _reference(x2, p5))), "case 5"

    # Case 6/7: larger map -> multi-row-tile grid (tm=512): patches that straddle
    # a row-tile boundary, a tile with no patch (pass-through branch), and a
    # destination band whose clamped source slice needs the residual sublane roll.
    H3, W3 = 1536, 640
    x3 = jax.random.normal(k_big, (1, 1, H3, W3), dtype=jnp.float32)
    p6 = (64, 480, 16, 900, 200)      # dest A spans the tile boundary at row 512
    p7 = (60, 1050, 100, 1400, 300)   # clamped band + residual roll in tile 2
    out6 = jax.block_until_ready(fwd(x3, jnp.array(p6, jnp.int32)))
    out7 = jax.block_until_ready(fwd(x3, jnp.array(p7, jnp.int32)))
    assert bool(jnp.allclose(out6, _reference(x3, p6))), "case 6"
    assert bool(jnp.allclose(out7, _reference(x3, p7))), "case 7"

    print("KERNEL_OK")
</pallas_src>

<mosaic_0001>
module attributes {stable_mosaic.version = 11 : i64} {
  func.func @_swap_kernel(%arg0: i32, %arg1: memref<5xi32, #tpu.memory_space<smem>>, %arg2: memref<16x128xf32, #tpu.memory_space<vmem>>, %arg3: memref<16x128xf32, #tpu.memory_space<vmem>>) attributes {dimension_semantics = [#tpu.dimension_semantics<arbitrary>], iteration_bounds = array<i64: 1>, scalar_prefetch = 1 : i64, scratch_operands = 0 : i64, tpu.core_type = #tpu.core_type<tc>, window_params = [{pipeline_mode = #tpu.pipeline_mode<synchronous>, transform_indices = @transform_0, window_bounds = array<i64: 16, 128>}, {transform_indices = @transform_1, window_bounds = array<i64: 16, 128>}]} {
    %c0 = arith.constant 0 : index
    %0 = memref.load %arg1[%c0] : memref<5xi32, #tpu.memory_space<smem>>
    %c1 = arith.constant 1 : index
    %1 = memref.load %arg1[%c1] : memref<5xi32, #tpu.memory_space<smem>>
    %c2 = arith.constant 2 : index
    %2 = memref.load %arg1[%c2] : memref<5xi32, #tpu.memory_space<smem>>
    %c3 = arith.constant 3 : index
    %3 = memref.load %arg1[%c3] : memref<5xi32, #tpu.memory_space<smem>>
    %c4 = arith.constant 4 : index
    %4 = memref.load %arg1[%c4] : memref<5xi32, #tpu.memory_space<smem>>
    %c16_i32 = arith.constant 16 : i32
    %5 = arith.muli %arg0, %c16_i32 : i32
    %6 = tpu.assume_multiple %5, 16 : i32
    %7 = arith.index_cast %6 : i32 to index
    %c0_0 = arith.constant 0 : index
    %8 = vector.load %arg2[%7, %c0_0] : memref<16x128xf32, #tpu.memory_space<vmem>>, vector<16x128xf32>
    %c0_i32 = arith.constant 0 : i32
    %9 = arith.cmpi sgt, %0, %c0_i32 : i32
    %c16_i32_1 = arith.constant 16 : i32
    %10 = arith.addi %6, %c16_i32_1 : i32
    %11 = arith.cmpi slt, %1, %10 : i32
    %12 = arith.addi %1, %0 : i32
    %13 = arith.cmpi sgt, %12, %6 : i32
    %14 = arith.andi %11, %13 : i1
    %c16_i32_2 = arith.constant 16 : i32
    %15 = arith.addi %6, %c16_i32_2 : i32
    %16 = arith.cmpi slt, %3, %15 : i32
    %17 = arith.addi %3, %0 : i32
    %18 = arith.cmpi sgt, %17, %6 : i32
    %19 = arith.andi %16, %18 : i1
    %20 = arith.ori %14, %19 : i1
    %21 = arith.andi %9, %20 : i1
    %true = arith.constant true
    %22 = arith.xori %21, %true : i1
    %23 = arith.extui %22 : i1 to i32
    %c0_i32_3 = arith.constant 0 : i32
    %24 = arith.cmpi ne, %23, %c0_i32_3 : i32
    scf.if %24 {
      %c0_5 = arith.constant 0 : index
      %c0_6 = arith.constant 0 : index
      %27 = vector.load %arg3[%c0_5, %c0_6] : memref<16x128xf32, #tpu.memory_space<vmem>>, vector<16x128xf32>
      tpu.vector_store %arg3[%c0_5, %c0_6], %8 {strides = array<i32>} : memref<16x128xf32, #tpu.memory_space<vmem>>, vector<16x128xf32>,
    } else {
    }
    %25 = arith.extui %21 : i1 to i32
    %c0_i32_4 = arith.constant 0 : i32
    %26 = arith.cmpi ne, %25, %c0_i32_4 : i32
    scf.if %26 {
      %27 = tpu.iota {dimensions = array<i32: 0>} : vector<16x128xi32>
      %28 = vector.broadcast %6 : i32 to vector<16x128xi32>
      %29 = arith.addi %27, %28 : vector<16x128xi32>
      %30 = tpu.iota {dimensions = array<i32: 1>} : vector<16x128xi32>
      %31 = arith.addi %6, %3 : i32
      %32 = arith.subi %31, %1 : i32
      %c0_i32_5 = arith.constant 0 : i32
      %c0_i32_6 = arith.constant 0 : i32
      %33 = arith.maxsi %c0_i32_5, %32 : i32
      %34 = arith.minsi %c0_i32_6, %33 : i32
      %35 = arith.index_cast %34 : i32 to index
      %c0_7 = arith.constant 0 : index
      %36 = vector.load %arg2[%35, %c0_7] : memref<16x128xf32, #tpu.memory_space<vmem>>, vector<16x128xf32>
      %37 = arith.subi %34, %32 : i32
      %c16_i32_8 = arith.constant 16 : i32
      %c0_i32_9 = arith.constant 0 : i32
      %38 = arith.cmpi eq, %c16_i32_8, %c0_i32_9 : i32
      %c1_i32 = arith.constant 1 : i32
      %39 = arith.select %38, %c1_i32, %c16_i32_8 : i32
      %40 = arith.remsi %37, %39 : i32
      %c0_i32_10 = arith.constant 0 : i32
      %41 = arith.cmpi ne, %40, %c0_i32_10 : i32
      %c0_i32_11 = arith.constant 0 : i32
      %42 = arith.cmpi slt, %40, %c0_i32_11 : i32
      %c0_i32_12 = arith.constant 0 : i32
      %43 = arith.cmpi slt, %39, %c0_i32_12 : i32
      %44 = arith.xori %42, %43 : i1
      %45 = arith.andi %44, %41 : i1
      %46 = arith.addi %40, %39 : i32
      %47 = arith.select %45, %46, %40 : i32
      %48 = tpu.dynamic_rotate %36 by %47 dim 0 : vector<16x128xf32>, i32 -> vector<16x128xf32>
      %49 = arith.subi %2, %4 : i32
      %c128_i32 = arith.constant 128 : i32
      %c0_i32_13 = arith.constant 0 : i32
      %50 = arith.cmpi eq, %c128_i32, %c0_i32_13 : i32
      %c1_i32_14 = arith.constant 1 : i32
      %51 = arith.select %50, %c1_i32_14, %c128_i32 : i32
      %52 = arith.remsi %49, %51 : i32
      %c0_i32_15 = arith.constant 0 : i32
      %53 = arith.cmpi ne, %52, %c0_i32_15 : i32
      %c0_i32_16 = arith.constant 0 : i32
      %54 = arith.cmpi slt, %52, %c0_i32_16 : i32
      %c0_i32_17 = arith.constant 0 : i32
      %55 = arith.cmpi slt, %51, %c0_i32_17 : i32
      %56 = arith.xori %54, %55 : i1
      %57 = arith.andi %56, %53 : i1
      %58 = arith.addi %52, %51 : i32
      %59 = arith.select %57, %58, %52 : i32
      %60 = tpu.dynamic_rotate %48 by %59 dim 1 : vector<16x128xf32>, i32 -> vector<16x128xf32>
      %61 = vector.broadcast %1 : i32 to vector<16x128xi32>
      %62 = arith.cmpi sge, %29, %61 : vector<16x128xi32>
      %63 = arith.addi %1, %0 : i32
      %64 = vector.broadcast %63 : i32 to vector<16x128xi32>
      %65 = arith.cmpi slt, %29, %64 : vector<16x128xi32>
      %66 = arith.andi %62, %65 : vector<16x128xi1>
      %67 = vector.broadcast %2 : i32 to vector<16x128xi32>
      %68 = arith.cmpi sge, %30, %67 : vector<16x128xi32>
      %69 = arith.andi %66, %68 : vector<16x128xi1>
      %70 = arith.addi %2, %0 : i32
      %71 = vector.broadcast %70 : i32 to vector<16x128xi32>
      %72 = arith.cmpi slt, %30, %71 : vector<16x128xi32>
      %73 = arith.andi %69, %72 : vector<16x128xi1>
      %74 = arith.select %73, %60, %8 : vector<16x128xi1>, vector<16x128xf32>
      %75 = arith.addi %6, %1 : i32
      %76 = arith.subi %75, %3 : i32
      %c0_i32_18 = arith.constant 0 : i32
      %c0_i32_19 = arith.constant 0 : i32
      %77 = arith.maxsi %c0_i32_18, %76 : i32
      %78 = arith.minsi %c0_i32_19, %77 : i32
      %79 = arith.index_cast %78 : i32 to index
      %c0_20 = arith.constant 0 : index
      %80 = vector.load %arg2[%79, %c0_20] : memref<16x128xf32, #tpu.memory_space<vmem>>, vector<16x128xf32>
      %81 = arith.subi %78, %76 : i32
      %c16_i32_21 = arith.constant 16 : i32
      %c0_i32_22 = arith.constant 0 : i32
      %82 = arith.cmpi eq, %c16_i32_21, %c0_i32_22 : i32
      %c1_i32_23 = arith.constant 1 : i32
      %83 = arith.select %82, %c1_i32_23, %c16_i32_21 : i32
      %84 = arith.remsi %81, %83 : i32
      %c0_i32_24 = arith.constant 0 : i32
      %85 = arith.cmpi ne, %84, %c0_i32_24 : i32
      %c0_i32_25 = arith.constant 0 : i32
      %86 = arith.cmpi slt, %84, %c0_i32_25 : i32
      %c0_i32_26 = arith.constant 0 : i32
      %87 = arith.cmpi slt, %83, %c0_i32_26 : i32
      %88 = arith.xori %86, %87 : i1
      %89 = arith.andi %88, %85 : i1
      %90 = arith.addi %84, %83 : i32
      %91 = arith.select %89, %90, %84 : i32
      %92 = tpu.dynamic_rotate %80 by %91 dim 0 : vector<16x128xf32>, i32 -> vector<16x128xf32>
      %93 = arith.subi %4, %2 : i32
      %c128_i32_27 = arith.constant 128 : i32
      %c0_i32_28 = arith.constant 0 : i32
      %94 = arith.cmpi eq, %c128_i32_27, %c0_i32_28 : i32
      %c1_i32_29 = arith.constant 1 : i32
      %95 = arith.select %94, %c1_i32_29, %c128_i32_27 : i32
      %96 = arith.remsi %93, %95 : i32
      %c0_i32_30 = arith.constant 0 : i32
      %97 = arith.cmpi ne, %96, %c0_i32_30 : i32
      %c0_i32_31 = arith.constant 0 : i32
      %98 = arith.cmpi slt, %96, %c0_i32_31 : i32
      %c0_i32_32 = arith.constant 0 : i32
      %99 = arith.cmpi slt, %95, %c0_i32_32 : i32
      %100 = arith.xori %98, %99 : i1
      %101 = arith.andi %100, %97 : i1
      %102 = arith.addi %96, %95 : i32
      %103 = arith.select %101, %102, %96 : i32
      %104 = tpu.dynamic_rotate %92 by %103 dim 1 : vector<16x128xf32>, i32 -> vector<16x128xf32>
      %105 = vector.broadcast %3 : i32 to vector<16x128xi32>
      %106 = arith.cmpi sge, %29, %105 : vector<16x128xi32>
      %107 = arith.addi %3, %0 : i32
      %108 = vector.broadcast %107 : i32 to vector<16x128xi32>
      %109 = arith.cmpi slt, %29, %108 : vector<16x128xi32>
      %110 = arith.andi %106, %109 : vector<16x128xi1>
      %111 = vector.broadcast %4 : i32 to vector<16x128xi32>
      %112 = arith.cmpi sge, %30, %111 : vector<16x128xi32>
      %113 = arith.andi %110, %112 : vector<16x128xi1>
      %114 = arith.addi %4, %0 : i32
      %115 = vector.broadcast %114 : i32 to vector<16x128xi32>
      %116 = arith.cmpi slt, %30, %115 : vector<16x128xi32>
      %117 = arith.andi %113, %116 : vector<16x128xi1>
      %118 = arith.select %117, %104, %74 : vector<16x128xi1>, vector<16x128xf32>
      %c0_33 = arith.constant 0 : index
      %c0_34 = arith.constant 0 : index
      %119 = vector.load %arg3[%c0_33, %c0_34] : memref<16x128xf32, #tpu.memory_space<vmem>>, vector<16x128xf32>
      tpu.vector_store %arg3[%c0_33, %c0_34], %118 {strides = array<i32>} : memref<16x128xf32, #tpu.memory_space<vmem>>, vector<16x128xf32>,
    } else {
    }
    return
  }
  func.func @transform_0(%arg0: i32, %arg1: memref<5xi32, #tpu.memory_space<smem>>) -> (i32, i32) {
    %c0_i32 = arith.constant 0 : i32
    %c0_i32_0 = arith.constant 0 : i32
    %c0_i32_1 = arith.constant 0 : i32
    return %c0_i32, %c0_i32_0 : i32, i32
  }
  func.func @transform_1(%arg0: i32, %arg1: memref<5xi32, #tpu.memory_space<smem>>) -> (i32, i32) {
    %c0_i32 = arith.constant 0 : i32
    %c0_i32_0 = arith.constant 0 : i32
    return %arg0, %c0_i32 : i32, i32
  }
}

</mosaic_0001>

<bundles_post_ra>
// kernel: swap_code_forward.1
= control target key start
LH: loop header
LB: loop body
LE: loop exit
PB: predicated region body
PF: predicated region fallthrough
CT: control target
= control target key end

     0   :  { %s259_s12 = smov [#allocation3]   ;;  %s410_s0 = inlined_call_operand.vmem [shape: s32[5], index: 0, kind: input, shape index: {}]   ;;  %s411_s1 = inlined_call_operand.vmem [shape: f32[16,128], index: 1, kind: input, shape index: {}]   ;;  %s412_s2 = inlined_call_operand.vmem [shape: f32[16,128], index: 2, kind: output, shape index: {}]  }
   0x1   :  { %s8_s11 = sshll.u32 %s410_s0, 4  ;;  %s9_s11 = int_to_ptr.vmem [resolvable:$true] %s8_s11 }
   0x2   :  { %11 = dma.vmem_to_smem %s9_s11, 16, %s259_s12, [#allocation2] }
   0x3   :  { %257 = dma.done.wait [#allocation2], 16 }
   0x4   :  { %258 = vsyncadd [#allocation2], 4294967280 }
   0x5   :  { %14 = sfence }
   0x6   :  { %s278_s13 = sld [smem:[#allocation3]]  ;;  %v283_v0 = vld [vmem:[%s411_s1] sm:$0xff]  ;;  %v288_v1 = vld [vmem:[%s411_s1 + $0x8] sm:$0xff] }
   0x7   :  { %s290_s0 = sld [smem:[#allocation3 + $0x1]] }
   0x8   :  { %s292_s18 = sld [smem:[#allocation3 + $0x2]] }
   0x9   :  { %s294_s19 = sld [smem:[#allocation3 + $0x3]] }
   0xa   :  { %s296_s20 = sld [smem:[#allocation3 + $0x4]] }
   0xc   :  { %p26_p7 = scmp.gt.s32.totalorder %s278_s13, 0 }
   0xd   :  { %p28_p0 = scmp.lt.s32.totalorder %s290_s0, 16  ;;  %s301_s21 = sadd.s32 %s290_s0, %s278_s13 }
   0xe   :  { %p30_p1 = scmp.gt.s32.totalorder %s301_s21, 0 }
   0xf   :  { %p33_p2 = scmp.lt.s32.totalorder %s294_s19, 16  ;;  %s307_s22 = sadd.s32 %s294_s19, %s278_s13 }
  0x10   :  { %p31_p3 = pnand %p30_p1, %p28_p0  ;;  %p35_p4 = scmp.gt.s32.totalorder %s307_s22, 0 }
  0x12   :  { %p32_p5 = pneg %p31_p3  ;;  %p36_p6 = pnand %p35_p4, %p33_p2 }
  0x14   :  { %p37_p8 = pneg %p36_p6 }
  0x16   :  { %p38_p9 = por %p37_p8, %p32_p5 }
  0x18   :  { %p311_p10 = pnand %p38_p9, %p26_p7 }
  0x19   :  { %s52_s24 = ssub.s32 (!%p311_p10), %s294_s19, %s290_s0  ;;  %s90_s25 = ssub.s32 (!%p311_p10), %s292_s18, %s296_s20 }
  0x1a   :  { %42 = sbr.rel (%p311_p10) target bundleno = 181 (0xb5), region = 9  ;;  %s60_s26 = ssub.s32 (!%p311_p10), 0, %s52_s24 }
  0x1b   :  { %p91_p11 = scmp.lt.s32.totalorder (!%p311_p10), %s90_s25, 0  ;;  %p61_p12 = scmp.lt.s32.totalorder (!%p311_p10), %s60_s26, 0 }
  0x1c   :  { %s62_s27 = ssub.s32 (!%p311_p10), 0, %s60_s26  ;;  %s92_s29 = ssub.s32 (!%p311_p10), 0, %s90_s25 }
  0x1d   :  { %s227_s28 = smin.u32 (!%p311_p10), %s62_s27, %s60_s26  ;;  %s230_s3 = smin.u32 (!%p311_p10), %s92_s29, %s90_s25 }
  0x1e   :  { %s64_s30 = sand.u32 (!%p311_p10), 15, %s227_s28   ;;  %s94_s5 = sand.u32 (!%p311_p10), 127, %s230_s3  }
  0x1f   :  { %s65_s4 = ssub.s32 0, %s64_s30  ;;  %v43_v2 = vlaneseq  ;;  %s95_s6 = ssub.s32 0, %s94_s5  ;;  %v58_v4 = vld [vmem:[%s411_s1] sm:$0xff]  ;;  %v59_v5 = vld [vmem:[%s411_s1 + $0x8] sm:$0xff]  ;;  %v109_v24 = vstv %s290_s0  ;;  %v112_v25 = vstv %s301_s21 }
  0x20   :  { %s423_s4 = smov (!%p61_p12, %s65_s4), %s64_s30  ;;  %s129_s7 = ssub.s32 %s290_s0, %s294_s19  ;;  %v117_v28 = vstv %s292_s18  ;;  %v186_v29 = vstv %s294_s19  ;;  %v189_v30 = vstv %s307_s22  ;;  %v194_v34 = vstv %s296_s20 }
  0x21   :  { %p229_p13 = scmp.lt.s32.totalorder %s423_s4, 0  ;;  %s71_s8 = sadd.s32 16, %s423_s4  ;;  %v325_v3 = vshrl.u32 %v43_v2, 7  ;;  %v50_v26 = vand.u32 127, %v43_v2 }
  0x22   :  { %s425_s6 = smov (!%p91_p11, %s95_s6), %s94_s5  ;;  %s137_s11 = ssub.s32 0, %s129_s7 }
  0x23   :  { %s427_s8 = smov (!%p229_p13, %s71_s8), %s423_s4  ;;  %p232_p0 = scmp.lt.s32.totalorder %s425_s6, 0  ;;  %vm348_vm4 = vcmp.ge.s32.totalorder %v325_v3, %v109_v24  ;;  %vm113_vm5 = vcmp.lt.s32.totalorder %v325_v3, %v112_v25  ;;  %vm360_vm7 = vcmp.ge.s32.totalorder %v50_v26, %v117_v28  ;;  %vm365_vm8 = vcmp.ge.s32.totalorder %v325_v3, %v186_v29 }
  0x24   :  { %s101_s9 = sadd.s32 128, %s425_s6  ;;  %s73_s10 = sand.u32 15, %s427_s8   ;;  %vm115_vm6 = vmand %vm348_vm4, %vm113_vm5  ;;  %vm190_vm9 = vcmp.lt.s32.totalorder %v325_v3, %v189_v30  ;;  %v45_v35 = vadd.s32 8, %v325_v3  ;;  %vm378_vm13 = vcmp.ge.s32.totalorder %v50_v26, %v194_v34 }
  0x25   :  { %s74_s17 = sand.u32 7, %s73_s10   ;;  %s75_s24 = sshrl.u32 %s73_s10, 3  ;;  %vm119_vm10 = vmand %vm115_vm6, %vm360_vm7 }
  0x26   :  { %s76_s25 = ssub.s32 8, %s74_s17  ;;  %v81_v6 = vstv %s74_s17  ;;  %s85_s26 = sand.u32 1, %s75_s24  ;;  %vm192_vm12 = vmand %vm365_vm8, %vm190_vm9  ;;  %vm111_vm14 = vcmp.ge.s32.totalorder %v45_v35, %v109_v24  ;;  %vm114_vm15 = vcmp.lt.s32.totalorder %v45_v35, %v112_v25  ;;  %vm188_vm4 = vcmp.ge.s32.totalorder %v45_v35, %v186_v29 }
  0x27   :  { %v77_v7 = vstv %s76_s25  ;;  %vm82_vm0 = vcmp.lt.s32.totalorder %v325_v3, %v81_v6  ;;  %v86_v8 = vstv %s85_s26  ;;  %s429_s9 = smov (!%p232_p0, %s101_s9), %s425_s6  ;;  %p138_p1 = scmp.lt.s32.totalorder %s137_s11, 0  ;;  %vm191_vm5 = vcmp.lt.s32.totalorder %v45_v35, %v189_v30 }
  0x28   :  { %v78_v9 = vrot.slane %v58_v4, %v77_v7  ;;  %v80_v10 = vrot.slane %v59_v5, %v77_v7  ;;  %vm87_vm1 = vcmp.ne.s32.totalorder %v86_v8, 0  ;;  %s139_s1 = ssub.s32 0, %s137_s11  ;;  %s103_s27 = sand.u32 127, %s429_s9   ;;  %vm193_vm9 = vmand %vm188_vm4, %vm191_vm5 }
  0x29   :  { %s238_s28 = smin.u32 %s139_s1, %s137_s11  ;;  %s167_s30 = ssub.s32 %s296_s20, %s292_s18 }
  0x2a   :  { %v83_v11 = vsel %vm82_vm0, %v78_v9, %v80_v10  ;;  %v84_v12 = vsel %vm82_vm0, %v80_v10, %v78_v9  ;;  %s141_s29 = sand.u32 15, %s238_s28   ;;  %s169_s4 = ssub.s32 0, %s167_s30 }
  0x2b   :  { %v88_v13 = vsel %vm87_vm1, %v83_v11, %v84_v12  ;;  %s142_s3 = ssub.s32 0, %s141_s29  ;;  %s241_s6 = smin.u32 %s169_s4, %s167_s30  ;;  %v89_v14 = vsel %vm87_vm1, %v84_v12, %v83_v11  ;;  %vm196_vm1 = vmand %vm192_vm12, %vm378_vm13 }
  0x2c   :  { %105 = vrot.lane.b32.xlu0 %v88_v13, %s103_s27  ;;  %s431_s3 = smov (!%p138_p1, %s142_s3), %s141_s29  ;;  %p168_p3 = scmp.lt.s32.totalorder %s167_s30, 0  ;;  %vm197_vm12 = vmand %vm193_vm9, %vm378_vm13 }
  0x2d   :  { %p240_p2 = scmp.lt.s32.totalorder %s431_s3, 0  ;;  %s148_s5 = sadd.s32 16, %s431_s3 }
  0x2e   :  { %s171_s7 = sand.u32 127, %s241_s6   ;;  %s121_s17 = sadd.s32 %s292_s18, %s278_s13 }
  0x2f   :  { %s433_s5 = smov (!%p240_p2, %s148_s5), %s431_s3  ;;  %s172_s9 = ssub.s32 0, %s171_s7  ;;  %v122_v32 = vstv %s121_s17 }
  0x30   :  { %s150_s8 = sand.u32 15, %s433_s5   ;;  %s435_s9 = smov (!%p168_p3, %s172_s9), %s171_s7  ;;  %vm123_vm11 = vcmp.lt.s32.totalorder %v50_v26, %v122_v32 }
  0x31   :  { %s151_s10 = sand.u32 7, %s150_s8   ;;  %s152_s11 = sshrl.u32 %s150_s8, 3  ;;  %vm124_vm0 = vmand %vm119_vm10, %vm123_vm11 }
  0x32   :  { %s153_s12 = ssub.s32 8, %s151_s10  ;;  %v158_v15 = vstv %s151_s10  ;;  %s162_s14 = sand.u32 1, %s152_s11 }
  0x33   :  { %v154_v16 = vstv %s153_s12  ;;  %vm159_vm2 = vcmp.lt.s32.totalorder %v325_v3, %v158_v15  ;;  %v163_v17 = vstv %s162_s14  ;;  %p243_p4 = scmp.lt.s32.totalorder %s435_s9, 0  ;;  %s178_s15 = sadd.s32 128, %s435_s9 }
  0x34   :  { %107 = vrot.lane.b32.xlu0 %v89_v14, %s103_s27  ;;  %v155_v18 = vrot.slane %v58_v4, %v154_v16  ;;  %v157_v19 = vrot.slane %v59_v5, %v154_v16  ;;  %vm164_vm3 = vcmp.ne.s32.totalorder %v163_v17, 0  ;;  %s198_s0 = sadd.s32 %s296_s20, %s278_s13 }
  0x35   :  { %s437_s15 = smov (!%p243_p4, %s178_s15), %s435_s9  ;;  %v199_v37 = vstv %s198_s0 }
  0x36   :  { %v160_v20 = vsel %vm159_vm2, %v155_v18, %v157_v19  ;;  %v161_v21 = vsel %vm159_vm2, %v157_v19, %v155_v18  ;;  %s180_s16 = sand.u32 127, %s437_s15   ;;  %vm200_vm2 = vcmp.lt.s32.totalorder %v50_v26, %v199_v37 }
  0x37   :  { %v165_v22 = vsel %vm164_vm3, %v160_v20, %v161_v21  ;;  %v166_v23 = vsel %vm164_vm3, %v161_v21, %v160_v20  ;;  %vm116_vm3 = vmand %vm111_vm14, %vm114_vm15 }
  0x38   :  { %182 = vrot.lane.b32.xlu1 %v165_v22, %s180_s16  ;;  %vm201_vm6 = vmand %vm196_vm1, %vm200_vm2 }
  0x39   :  { %vm120_vm8 = vmand %vm116_vm3, %vm360_vm7 }
  0x3a   :  { %vm125_vm10 = vmand %vm120_vm8, %vm123_vm11 }
  0x3b   :  { %vm202_vm14 = vmand %vm197_vm12, %vm200_vm2 }
  0x40   :  { %184 = vrot.lane.b32.xlu1 %v166_v23, %s180_s16 }
  0x9e   :  { %v106_v38 = vpop.permute.xlu0 %105 }
  0x9f   :  { %v126_v39 = vsel %vm124_vm0, %v106_v38, %v283_v0 }
  0xa6   :  { %v108_v42 = vpop.permute.xlu0 %107 }
  0xa7   :  { %v127_v43 = vsel %vm125_vm10, %v108_v42, %v288_v1 }
  0xaa   :  { %v183_v40 = vpop.permute.xlu1 %182 }
  0xab   :  { %v203_v41 = vsel %vm201_vm6, %v183_v40, %v126_v39 }
  0xac   :  { %205 = vst [vmem:[%s412_s2] sm:$0xff] %v203_v41 }
  0xb2   :  { %v185_v44 = vpop.permute.xlu1 %184 }
  0xb3   :  { %v204_v45 = vsel %vm202_vm14, %v185_v44, %v127_v43 }
  0xb4   :  { %206 = vst [vmem:[%s412_s2 + $0x8] sm:$0xff] %v204_v45 }
  0xb5 PF:  { %209 = sbr.rel (!%p311_p10) target bundleno = 186 (0xba), region = 13  ;;  %210 = vst [vmem:[%s412_s2] sm:$0xff] (%p311_p10), %v283_v0 }
  0xb6   :  { %211 = vst [vmem:[%s412_s2 + $0x8] sm:$0xff] (%p311_p10), %v288_v1 }
  0xba PF:  {}

</bundles_post_ra>
